<compile_context>
chip_gen: v6e
topology: v6e:2x2x1
jax: 0.10.0
libtpu: 0.0.40
codegen_flags: <defaults>
</compile_context>

<pallas_src>
import functools
import math

import jax
import jax.numpy as jnp
from jax.experimental import pallas as pl
from jax.experimental.pallas import tpu as pltpu

SELU_SCALE = 1.0507009873554805
SELU_ALPHA = 1.6732632423543772
EPS = 1e-5


def _selu(x):
    return SELU_SCALE * jnp.where(x > 0, x, SELU_ALPHA * (jnp.exp(x) - 1.0))


def _round_up(n, m):
    return ((n + m - 1) // m) * m


def _lrp_kernel(x_ref, w1f_ref, w2f_ref, w2pf_ref, w2pg_ref, w1pg_ref,
                z1_ref, wl1_ref, wl1p_ref, wl2_ref, wl2p_ref, out_ref,
                *, K, L, TB):
    f32 = jnp.float32
    TBL = TB * L
    pad = K // 2
    inv_L = 1.0 / L

    x = x_ref[0]                     # (Cin_p, TBL): channels on sublanes, (sample,pos) on lanes

    # ---- lane-shift machinery: shifted_s[c, j] = a[c, j - s] inside a sample, else 0 ----
    lane = jax.lax.broadcasted_iota(jnp.int32, (1, TBL), 1)
    if TB == 1:
        pos = lane
    elif (L & (L - 1)) == 0:
        pos = jnp.bitwise_and(lane, L - 1)           # position within the length-L sample
    else:
        pos = lane % L

    mask_cache = {}

    def _shift_lanes(a, s):
        if s == 0:
            return a
        if s not in mask_cache:
            mask_cache[s] = ((pos >= s) & (pos < L + s)).astype(f32)
        # XLU lane roll (matches np.roll: out[j] = a[j - s]) + per-sample boundary mask.
        return pltpu.roll(a, shift=s % TBL, axis=1) * mask_cache[s]

    def shift_stack(a, shifts):
        # (C, TBL) -> (K*C, TBL); parts are 8-sublane aligned (channels padded in wrapper)
        return jnp.concatenate([_shift_lanes(a, s) for s in shifts], axis=0)

    fwd_shifts = [pad - k for k in range(K)]     # forward conv taps
    grad_shifts = [k - pad for k in range(K)]    # transposed conv (input gradient) taps

    def mm(a, b):
        return jnp.dot(a, b, preferred_element_type=f32)

    def mm_t0(w, v):                 # w.T @ v without materializing a transpose
        return jax.lax.dot_general(w, v, (((0,), (0,)), ((), ())),
                                   preferred_element_type=f32)

    # ---------------- forward pass (collect activations) ---------------------
    # Biases are folded into the fused weights: x carries a constant-1 channel slot and
    # every SELU output carries a 1.0 slot forward (wrapper sets the 1/SELU_SCALE entries).
    a1 = mm(w1f_ref[...], shift_stack(x, fwd_shifts))                   # (C1_p, TBL)
    a2 = _selu(a1)                                                       # ones-slot row == 1
    a2_stk = shift_stack(a2, fwd_shifts)                                 # reused by LRP-Conv2
    a3 = mm(w2f_ref[...], a2_stk)                                        # (C2_p, TBL)
    a4 = _selu(a3)

    # AdaptiveAvgPool1d(1) + Flatten -> per-sample mean, kept as (C2_p, TB)
    if TB == 1:
        a6 = jnp.sum(a4, axis=1, keepdims=True) * inv_L
    else:
        trow = jax.lax.broadcasted_iota(jnp.int32, (TB, TBL), 0)
        jcol = jax.lax.broadcasted_iota(jnp.int32, (TB, TBL), 1)
        poolT = ((jcol >= trow * L) & (jcol < (trow + 1) * L)).astype(f32)   # (TB, TBL)
        a6 = jax.lax.dot_general(a4, poolT, (((1,), (1,)), ((), ())),
                                 preferred_element_type=f32) * inv_L         # (C2_p, TB)

    a7 = mm(wl1_ref[...], a6)                                            # (H_p, TB)
    a8 = _selu(a7)
    a9 = mm(wl2_ref[...], a8)                                            # (NC, TB) logits

    # initial relevance = softmax(logits, dim=-1) (class axis = sublanes here)
    m = jnp.max(a9, axis=0, keepdims=True)
    e = jnp.exp(a9 - m)
    r = e / jnp.sum(e, axis=0, keepdims=True)                            # (NC, TB)

    # ---------------- LRP backward pass ---------------------------------------
    # TODO(synk): relevance_filter (top-k scatter) skipped; LRPModel default top_k=0.0 disables it.

    # Linear2 (z+ rule: clamped weights, zero bias)
    wl2p = wl2p_ref[...]
    z = mm(wl2p, a8) + EPS
    r = a8 * mm_t0(wl2p, r / z)                                          # (H_p, TB)
    # SELU: relevance pass-through
    # Linear1 (z+ rule)
    wl1p = wl1p_ref[...]
    z = mm(wl1p, a6) + EPS
    r = a6 * mm_t0(wl1p, r / z)                                          # (C2_p, TB)
    # Flatten: pure reshape (layout already matches)
    # AdaptiveAvgPool1d(1): z = mean + eps; grad redistributes uniformly over L positions
    s = r / (a6 + EPS)                                                   # (C2_p, TB)
    if TB == 1:
        r = a4 * (s * inv_L)
    else:
        r = a4 * (mm(s, poolT) * inv_L)                                  # (C2_p, TBL)
    # SELU: relevance pass-through
    # Conv2 (z+ rule)
    z = mm(w2pf_ref[...], a2_stk) + EPS                                  # (C2_p, TBL)
    r = a2 * mm(w2pg_ref[...], shift_stack(r / z, grad_shifts))          # (C1_p, TBL)
    # SELU: relevance pass-through
    # Conv1 (z+ rule): the reference stores ones_like(x) as the input activation, so the
    # z-term is constant (precomputed in the wrapper) and the trailing (ones * c) is identity.
    r = mm(w1pg_ref[...], shift_stack(r / z1_ref[...], grad_shifts))     # (Cin_p, TBL)

    out_ref[0] = r


def lrp_model_forward(x, params, tb=None):
    """x: (N, Cin, L) float32. Returns relevance permuted to (N, L, Cin) (then squeezed)."""
    W1, b1, W2, b2, Wl1, bl1, Wl2, bl2 = params
    N, Cin, L = x.shape
    C1, _, K = W1.shape
    C2 = W2.shape[0]
    H = Wl1.shape[0]
    NC = Wl2.shape[0]
    pad = K // 2
    f32 = jnp.float32
    inv_scale = 1.0 / SELU_SCALE

    # --- lane-dense batch packing: tb samples per tile with tb*L a multiple of 128 ---
    base = 128 // math.gcd(L, 128)          # smallest tb with tb*L % 128 == 0
    if tb is None:
        max_lanes = 2048                    # keeps the per-tile working set to a few MB
        cap = max(base, (max_lanes // L) // base * base)
        tb = min(_round_up(N, base), cap)
    else:
        tb = max(base, _round_up(tb, base))  # honor lane density even for explicit tb
    TBL = tb * L
    n_tiles = -(-N // tb)
    n_pad = n_tiles * tb

    x = x.astype(f32)
    if n_pad != N:                           # pad the batch with copies of the last sample
        x = jnp.concatenate(
            [x, jnp.broadcast_to(x[-1:], (n_pad - N, Cin, L))], axis=0)

    # --- pad channel dims to sublane multiples (8 for f32), keeping a free "ones" slot ---
    Cin_p = _round_up(Cin + 1, 8)
    C1_p = _round_up(C1 + 1, 8)
    C2_p = _round_up(C2 + 1, 8)
    H_p = _round_up(H + 1, 8)
    cin_slot, c1_slot, c2_slot, h_slot = Cin, C1, C2, H

    def pad_to(a, shape):
        widths = [(0, t - s) for s, t in zip(a.shape, shape)]
        return jnp.pad(a.astype(f32), widths)

    W1z = pad_to(W1, (C1_p, Cin_p, K))
    W2z = pad_to(W2, (C2_p, C1_p, K))
    Wl1z = pad_to(Wl1, (H_p, C2_p))
    Wl2z = pad_to(Wl2, (NC, H_p))

    # z+ clamped weights (bias-free, as in the reference), hoisted out of the kernel
    W1p = jnp.maximum(W1z, 0.0)
    W2p = jnp.maximum(W2z, 0.0)
    Wl1p = jnp.maximum(Wl1z, 0.0)
    Wl2p = jnp.maximum(Wl2z, 0.0)

    # Forward weights with the biases folded onto the "ones" channel chain:
    #   x[:, cin_slot, :] == 1  ->  a2[c1_slot] == 1  ->  a4/a6[c2_slot] == 1  ->  a8[h_slot] == 1
    W1f = W1z.at[:C1, cin_slot, pad].set(b1.astype(f32))
    W1f = W1f.at[c1_slot, cin_slot, pad].set(inv_scale)        # selu(1/scale) == 1
    W2f = W2z.at[:C2, c1_slot, pad].set(b2.astype(f32))
    W2f = W2f.at[c2_slot, c1_slot, pad].set(inv_scale)
    Wl1f = Wl1z.at[:H, c2_slot].set(bl1.astype(f32))
    Wl1f = Wl1f.at[h_slot, c2_slot].set(inv_scale)
    Wl2f = Wl2z.at[:, h_slot].set(bl2.astype(f32))

    # Fused per-conv weights: forward (Co, K*Ci) with column index k*Ci + ci,
    # input-gradient (transposed conv) (Ci, K*Co) with column index k*Co + co.
    def fuse_fwd(W):   # (Co, Ci, K) -> (Co, K*Ci)
        Co, Ci, Kk = W.shape
        return jnp.transpose(W, (0, 2, 1)).reshape(Co, Kk * Ci)

    def fuse_grad(W):  # (Co, Ci, K) -> (Ci, K*Co)
        Co, Ci, Kk = W.shape
        return jnp.transpose(W, (1, 2, 0)).reshape(Ci, Kk * Co)

    w1f = fuse_fwd(W1f)
    w2f = fuse_fwd(W2f)
    w2pf = fuse_fwd(W2p)
    w2pg = fuse_grad(W2p)
    w1pg = fuse_grad(W1p)

    # Conv1 z-term: the reference uses ones_like(x) as the activation, so
    # z = conv(ones, W1p) + eps depends only on W1p and the padding pattern.
    ks = jnp.arange(K)[:, None]
    ls = jnp.arange(L)[None, :]
    valid = ((ls + ks - pad >= 0) & (ls + ks - pad < L)).astype(f32)     # (K, L)
    z1 = jnp.dot(W1p.sum(axis=1), valid) + EPS                           # (C1_p, L)
    z1t = jnp.tile(z1, (1, tb))                                          # (C1_p, TBL)

    # pack TB samples per tile: (n_tiles, Cin_p, TB*L), channels on sublanes,
    # (sample-in-tile, position) flattened onto lanes; the bias slot channel is all ones.
    x = pad_to(x, (n_pad, Cin_p, L))
    x = x.at[:, cin_slot, :].set(1.0)
    x_tiles = (x.reshape(n_tiles, tb, Cin_p, L)
                .transpose(0, 2, 1, 3)
                .reshape(n_tiles, Cin_p, TBL))

    kernel = functools.partial(_lrp_kernel, K=K, L=L, TB=tb)

    def const_spec(a):   # full-array constant block (weights etc.)
        return pl.BlockSpec(a.shape, lambda n: (0,) * a.ndim)

    rel = pl.pallas_call(
        kernel,
        out_shape=jax.ShapeDtypeStruct((n_tiles, Cin_p, TBL), f32),
        grid=(n_tiles,),
        in_specs=[
            pl.BlockSpec((1, Cin_p, TBL), lambda n: (n, 0, 0)),
            const_spec(w1f), const_spec(w2f), const_spec(w2pf),
            const_spec(w2pg), const_spec(w1pg), const_spec(z1t),
            const_spec(Wl1f), const_spec(Wl1p), const_spec(Wl2f), const_spec(Wl2p),
        ],
        out_specs=pl.BlockSpec((1, Cin_p, TBL), lambda n: (n, 0, 0)),
        compiler_params=pltpu.CompilerParams(dimension_semantics=("parallel",)),
    )(x_tiles, w1f, w2f, w2pf, w2pg, w1pg, z1t, Wl1f, Wl1p, Wl2f, Wl2p)

    # unpack tiles, drop padded channels / padded samples; relevance.permute(0,2,1).squeeze()
    rel = rel.reshape(n_tiles, Cin_p, tb, L)[:, :Cin]
    rel = rel.transpose(0, 2, 3, 1).reshape(n_pad, L, Cin)[:N]
    return jnp.squeeze(rel)


def lrp_reference(x, params):
    """Pure-JAX mirror of LRPModel.forward (validation only, no Pallas)."""
    W1, b1, W2, b2, Wl1, bl1, Wl2, bl2 = [p.astype(jnp.float32) for p in params]
    x = x.astype(jnp.float32)
    K = W1.shape[-1]
    pad = K // 2
    hi = jax.lax.Precision.HIGHEST

    def conv1d(a, W, b=None):
        out = jax.lax.conv_general_dilated(
            a, W, window_strides=(1,), padding=[(pad, pad)],
            dimension_numbers=("NCH", "OIH", "NCH"), precision=hi)
        if b is not None:
            out = out + b[None, :, None]
        return out

    acts = [jnp.ones_like(x)]
    a = conv1d(x, W1, b1); acts.append(a)
    a = _selu(a); acts.append(a)
    a = conv1d(a, W2, b2); acts.append(a)
    a = _selu(a); acts.append(a)
    a = jnp.mean(a, axis=-1, keepdims=True); acts.append(a)      # AdaptiveAvgPool1d(1)
    a = a.reshape(a.shape[0], -1); acts.append(a)                # Flatten
    a = jnp.dot(a, Wl1.T, precision=hi) + bl1; acts.append(a)
    a = _selu(a); acts.append(a)
    a = jnp.dot(a, Wl2.T, precision=hi) + bl2; acts.append(a)
    acts = acts[::-1]

    r = jax.nn.softmax(acts[0], axis=-1)
    W1p, W2p = jnp.maximum(W1, 0.0), jnp.maximum(W2, 0.0)
    Wl1p, Wl2p = jnp.maximum(Wl1, 0.0), jnp.maximum(Wl2, 0.0)

    def lrp_autograd(layer_fn, a, r):
        z, vjp = jax.vjp(layer_fn, a)
        (c,) = vjp(r / (z + EPS))
        return a * c

    a8 = acts[1]                                                  # LRPLinear(Lin2)
    z = jnp.dot(a8, Wl2p.T, precision=hi) + EPS
    r = a8 * jnp.dot(r / z, Wl2p, precision=hi)
    a6 = acts[3]                                                  # LRPLinear(Lin1)
    z = jnp.dot(a6, Wl1p.T, precision=hi) + EPS
    r = a6 * jnp.dot(r / z, Wl1p, precision=hi)
    r = r.reshape(acts[4].shape)                                  # LRPFlatten
    r = lrp_autograd(lambda v: jnp.mean(v, axis=-1, keepdims=True), acts[5], r)  # pool
    r = lrp_autograd(lambda v: conv1d(v, W2p), acts[7], r)        # LRPConv1d(Conv2)
    r = lrp_autograd(lambda v: conv1d(v, W1p), acts[9], r)        # LRPConv1d(Conv1), a=ones
    return jnp.squeeze(jnp.transpose(r, (0, 2, 1)))


if __name__ == "__main__":
    # Small shapes consistent with the module's forward.
    N, Cin, L = 2, 4, 16
    C1, C2, K = 8, 8, 3
    H, NC = 16, 4

    key = jax.random.PRNGKey(0)
    ks = jax.random.split(key, 10)
    x = jax.random.normal(ks[0], (N, Cin, L), jnp.float32)

    W1 = 0.3 * jax.random.normal(ks[1], (C1, Cin, K), jnp.float32)
    b1 = 0.1 * jax.random.normal(ks[2], (C1,), jnp.float32)
    W2 = 0.3 * jax.random.normal(ks[3], (C2, C1, K), jnp.float32)
    b2 = 0.1 * jax.random.normal(ks[4], (C2,), jnp.float32)
    Wl1 = 0.3 * jax.random.normal(ks[5], (H, C2), jnp.float32)
    bl1 = 0.1 * jax.random.normal(ks[6], (H,), jnp.float32)
    Wl2 = 0.3 * jax.random.normal(ks[7], (NC, H), jnp.float32)
    bl2 = 0.1 * jax.random.normal(ks[8], (NC,), jnp.float32)
    params = (W1, b1, W2, b2, Wl1, bl1, Wl2, bl2)

    # single lane-dense tile (tb=8 -> 128 lanes), validated against the pure-JAX reference
    out = jax.block_until_ready(lrp_model_forward(x, params))
    assert out.shape == (N, L, Cin), out.shape
    assert bool(jnp.all(jnp.isfinite(out)))
    ref = jax.block_until_ready(lrp_reference(x, params))
    assert bool(jnp.allclose(out, ref, rtol=2e-3, atol=1e-4)), (
        float(jnp.max(jnp.abs(out - ref))))

    # multi-tile grid + batch-padding path: 10 samples, 8 per lane-dense tile (2 grid steps)
    N2 = 10
    x2 = jax.random.normal(ks[9], (N2, Cin, L), jnp.float32)
    out2 = jax.block_until_ready(lrp_model_forward(x2, params, tb=8))
    ref2 = jax.block_until_ready(lrp_reference(x2, params))
    assert out2.shape == (N2, L, Cin), out2.shape
    assert bool(jnp.allclose(out2, ref2, rtol=2e-3, atol=1e-4)), (
        float(jnp.max(jnp.abs(out2 - ref2))))

    print("KERNEL_OK")
</pallas_src>

<mosaic_0001>
module attributes {stable_mosaic.version = 11 : i64} {
  func.func @_lrp_kernel(%arg0: i32, %arg1: memref<1x8x128xf32, #tpu.memory_space<vmem>>, %arg2: memref<16x24xf32, #tpu.memory_space<vmem>>, %arg3: memref<16x48xf32, #tpu.memory_space<vmem>>, %arg4: memref<16x48xf32, #tpu.memory_space<vmem>>, %arg5: memref<16x48xf32, #tpu.memory_space<vmem>>, %arg6: memref<8x48xf32, #tpu.memory_space<vmem>>, %arg7: memref<16x128xf32, #tpu.memory_space<vmem>>, %arg8: memref<24x16xf32, #tpu.memory_space<vmem>>, %arg9: memref<24x16xf32, #tpu.memory_space<vmem>>, %arg10: memref<4x24xf32, #tpu.memory_space<vmem>>, %arg11: memref<4x24xf32, #tpu.memory_space<vmem>>, %arg12: memref<1x8x128xf32, #tpu.memory_space<vmem>>) attributes {dimension_semantics = [#tpu.dimension_semantics<parallel>], iteration_bounds = array<i64: 1>, scalar_prefetch = 0 : i64, scratch_operands = 0 : i64, tpu.core_type = #tpu.core_type<tc>, window_params = [{transform_indices = @transform_0, window_bounds = array<i64: 1, 8, 128>}, {pipeline_mode = #tpu.pipeline_mode<synchronous>, transform_indices = @transform_1, window_bounds = array<i64: 16, 24>}, {pipeline_mode = #tpu.pipeline_mode<synchronous>, transform_indices = @transform_2, window_bounds = array<i64: 16, 48>}, {pipeline_mode = #tpu.pipeline_mode<synchronous>, transform_indices = @transform_3, window_bounds = array<i64: 16, 48>}, {pipeline_mode = #tpu.pipeline_mode<synchronous>, transform_indices = @transform_4, window_bounds = array<i64: 16, 48>}, {pipeline_mode = #tpu.pipeline_mode<synchronous>, transform_indices = @transform_5, window_bounds = array<i64: 8, 48>}, {pipeline_mode = #tpu.pipeline_mode<synchronous>, transform_indices = @transform_6, window_bounds = array<i64: 16, 128>}, {pipeline_mode = #tpu.pipeline_mode<synchronous>, transform_indices = @transform_7, window_bounds = array<i64: 24, 16>}, {pipeline_mode = #tpu.pipeline_mode<synchronous>, transform_indices = @transform_8, window_bounds = array<i64: 24, 16>}, {pipeline_mode = #tpu.pipeline_mode<synchronous>, transform_indices = @transform_9, window_bounds = array<i64: 4, 24>}, {pipeline_mode = #tpu.pipeline_mode<synchronous>, transform_indices = @transform_10, window_bounds = array<i64: 4, 24>}, {transform_indices = @transform_11, window_bounds = array<i64: 1, 8, 128>}]} {
    %c0 = arith.constant 0 : index
    %c0_0 = arith.constant 0 : index
    %c0_1 = arith.constant 0 : index
    %0 = vector.load %arg1[%c0, %c0_0, %c0_1] : memref<1x8x128xf32, #tpu.memory_space<vmem>>, vector<1x8x128xf32>
    %1 = vector.shape_cast %0 : vector<1x8x128xf32> to vector<8x128xf32>
    %2 = tpu.iota {dimensions = array<i32: 1>} : vector<1x128xi32>
    %c15_i32 = arith.constant 15 : i32
    %3 = vector.broadcast %c15_i32 : i32 to vector<1x128xi32>
    %4 = arith.andi %2, %3 : vector<1x128xi32>
    %c0_2 = arith.constant 0 : index
    %c0_3 = arith.constant 0 : index
    %5 = vector.load %arg2[%c0_2, %c0_3] : memref<16x24xf32, #tpu.memory_space<vmem>>, vector<16x24xf32>
    %c1_i32 = arith.constant 1 : i32
    %6 = vector.broadcast %c1_i32 : i32 to vector<1x128xi32>
    %7 = arith.cmpi sge, %4, %6 : vector<1x128xi32>
    %c17_i32 = arith.constant 17 : i32
    %8 = vector.broadcast %c17_i32 : i32 to vector<1x128xi32>
    %9 = arith.cmpi slt, %4, %8 : vector<1x128xi32>
    %10 = arith.andi %7, %9 : vector<1x128xi1>
    %11 = arith.extui %10 : vector<1x128xi1> to vector<1x128xi32>
    %12 = arith.sitofp %11 : vector<1x128xi32> to vector<1x128xf32>
    %c1_i32_4 = arith.constant 1 : i32
    %13 = tpu.dynamic_rotate %1 by %c1_i32_4 dim 1 : vector<8x128xf32>, i32 -> vector<8x128xf32>
    %14 = vector.broadcast %12 : vector<1x128xf32> to vector<8x128xf32>
    %15 = arith.mulf %13, %14 : vector<8x128xf32>
    %c-1_i32 = arith.constant -1 : i32
    %16 = vector.broadcast %c-1_i32 : i32 to vector<1x128xi32>
    %17 = arith.cmpi sge, %4, %16 : vector<1x128xi32>
    %c15_i32_5 = arith.constant 15 : i32
    %18 = vector.broadcast %c15_i32_5 : i32 to vector<1x128xi32>
    %19 = arith.cmpi slt, %4, %18 : vector<1x128xi32>
    %20 = arith.andi %17, %19 : vector<1x128xi1>
    %21 = arith.extui %20 : vector<1x128xi1> to vector<1x128xi32>
    %22 = arith.sitofp %21 : vector<1x128xi32> to vector<1x128xf32>
    %c127_i32 = arith.constant 127 : i32
    %23 = tpu.dynamic_rotate %1 by %c127_i32 dim 1 : vector<8x128xf32>, i32 -> vector<8x128xf32>
    %24 = vector.broadcast %22 : vector<1x128xf32> to vector<8x128xf32>
    %25 = arith.mulf %23, %24 : vector<8x128xf32>
    %26 = tpu.concatenate %15, %1, %25 in 0 : vector<8x128xf32>, vector<8x128xf32>, vector<8x128xf32> -> vector<24x128xf32>
    %cst = arith.constant dense<0.000000e+00> : vector<16x128xf32>
    %27 = tpu.matmul %5, %26, %cst {dimension_numbers = #tpu.dot_dimension_numbers<[1], [0], [0], [1], [0, 0, 1, 1], [], []>} : vector<16x24xf32>, vector<24x128xf32>, vector<16x128xf32> -> vector<16x128xf32>
    %cst_6 = arith.constant 0.000000e+00 : f32
    %28 = vector.broadcast %cst_6 : f32 to vector<16x128xf32>
    %29 = arith.cmpf ogt, %27, %28 : vector<16x128xf32>
    %30 = math.exp %27 : vector<16x128xf32>
    %cst_7 = arith.constant 1.000000e+00 : f32
    %31 = vector.broadcast %cst_7 : f32 to vector<16x128xf32>
    %32 = arith.subf %30, %31 : vector<16x128xf32>
    %cst_8 = arith.constant 1.67326319 : f32
    %33 = vector.broadcast %cst_8 : f32 to vector<16x128xf32>
    %34 = arith.mulf %33, %32 : vector<16x128xf32>
    %35 = arith.select %29, %27, %34 : vector<16x128xi1>, vector<16x128xf32>
    %cst_9 = arith.constant 1.05070102 : f32
    %36 = vector.broadcast %cst_9 : f32 to vector<16x128xf32>
    %37 = arith.mulf %36, %35 : vector<16x128xf32>
    %c1_i32_10 = arith.constant 1 : i32
    %38 = tpu.dynamic_rotate %37 by %c1_i32_10 dim 1 : vector<16x128xf32>, i32 -> vector<16x128xf32>
    %39 = vector.broadcast %12 : vector<1x128xf32> to vector<16x128xf32>
    %40 = arith.mulf %38, %39 : vector<16x128xf32>
    %c127_i32_11 = arith.constant 127 : i32
    %41 = tpu.dynamic_rotate %37 by %c127_i32_11 dim 1 : vector<16x128xf32>, i32 -> vector<16x128xf32>
    %42 = vector.broadcast %22 : vector<1x128xf32> to vector<16x128xf32>
    %43 = arith.mulf %41, %42 : vector<16x128xf32>
    %44 = tpu.concatenate %40, %37, %43 in 0 : vector<16x128xf32>, vector<16x128xf32>, vector<16x128xf32> -> vector<48x128xf32>
    %c0_12 = arith.constant 0 : index
    %c0_13 = arith.constant 0 : index
    %45 = vector.load %arg3[%c0_12, %c0_13] : memref<16x48xf32, #tpu.memory_space<vmem>>, vector<16x48xf32>
    %cst_14 = arith.constant dense<0.000000e+00> : vector<16x128xf32>
    %46 = tpu.matmul %45, %44, %cst_14 {dimension_numbers = #tpu.dot_dimension_numbers<[1], [0], [0], [1], [0, 0, 1, 1], [], []>} : vector<16x48xf32>, vector<48x128xf32>, vector<16x128xf32> -> vector<16x128xf32>
    %cst_15 = arith.constant 0.000000e+00 : f32
    %47 = vector.broadcast %cst_15 : f32 to vector<16x128xf32>
    %48 = arith.cmpf ogt, %46, %47 : vector<16x128xf32>
    %49 = math.exp %46 : vector<16x128xf32>
    %cst_16 = arith.constant 1.000000e+00 : f32
    %50 = vector.broadcast %cst_16 : f32 to vector<16x128xf32>
    %51 = arith.subf %49, %50 : vector<16x128xf32>
    %cst_17 = arith.constant 1.67326319 : f32
    %52 = vector.broadcast %cst_17 : f32 to vector<16x128xf32>
    %53 = arith.mulf %52, %51 : vector<16x128xf32>
    %54 = arith.select %48, %46, %53 : vector<16x128xi1>, vector<16x128xf32>
    %cst_18 = arith.constant 1.05070102 : f32
    %55 = vector.broadcast %cst_18 : f32 to vector<16x128xf32>
    %56 = arith.mulf %55, %54 : vector<16x128xf32>
    %57 = tpu.iota {dimensions = array<i32: 0>} : vector<8x128xi32>
    %58 = tpu.iota {dimensions = array<i32: 1>} : vector<8x128xi32>
    %c16_i32 = arith.constant 16 : i32
    %59 = vector.broadcast %c16_i32 : i32 to vector<8x128xi32>
    %60 = arith.muli %57, %59 : vector<8x128xi32>
    %61 = arith.cmpi sge, %58, %60 : vector<8x128xi32>
    %c1_i32_19 = arith.constant 1 : i32
    %62 = vector.broadcast %c1_i32_19 : i32 to vector<8x128xi32>
    %63 = arith.addi %57, %62 : vector<8x128xi32>
    %c16_i32_20 = arith.constant 16 : i32
    %64 = vector.broadcast %c16_i32_20 : i32 to vector<8x128xi32>
    %65 = arith.muli %63, %64 : vector<8x128xi32>
    %66 = arith.cmpi slt, %58, %65 : vector<8x128xi32>
    %67 = arith.andi %61, %66 : vector<8x128xi1>
    %68 = arith.extui %67 : vector<8x128xi1> to vector<8x128xi32>
    %69 = arith.sitofp %68 : vector<8x128xi32> to vector<8x128xf32>
    %cst_21 = arith.constant dense<0.000000e+00> : vector<16x8xf32>
    %70 = tpu.matmul %56, %69, %cst_21 {dimension_numbers = #tpu.dot_dimension_numbers<[1], [1], [0], [0], [0, 0, 1, 0], [], []>} : vector<16x128xf32>, vector<8x128xf32>, vector<16x8xf32> -> vector<16x8xf32>
    %cst_22 = arith.constant 6.250000e-02 : f32
    %71 = vector.broadcast %cst_22 : f32 to vector<16x8xf32>
    %72 = arith.mulf %70, %71 : vector<16x8xf32>
    %c0_23 = arith.constant 0 : index
    %c0_24 = arith.constant 0 : index
    %73 = vector.load %arg8[%c0_23, %c0_24] : memref<24x16xf32, #tpu.memory_space<vmem>>, vector<24x16xf32>
    %cst_25 = arith.constant dense<0.000000e+00> : vector<24x8xf32>
    %74 = tpu.matmul %73, %72, %cst_25 {dimension_numbers = #tpu.dot_dimension_numbers<[1], [0], [0], [1], [0, 0, 1, 1], [], []>} : vector<24x16xf32>, vector<16x8xf32>, vector<24x8xf32> -> vector<24x8xf32>
    %cst_26 = arith.constant 0.000000e+00 : f32
    %75 = vector.broadcast %cst_26 : f32 to vector<24x8xf32>
    %76 = arith.cmpf ogt, %74, %75 : vector<24x8xf32>
    %77 = math.exp %74 : vector<24x8xf32>
    %cst_27 = arith.constant 1.000000e+00 : f32
    %78 = vector.broadcast %cst_27 : f32 to vector<24x8xf32>
    %79 = arith.subf %77, %78 : vector<24x8xf32>
    %cst_28 = arith.constant 1.67326319 : f32
    %80 = vector.broadcast %cst_28 : f32 to vector<24x8xf32>
    %81 = arith.mulf %80, %79 : vector<24x8xf32>
    %82 = arith.select %76, %74, %81 : vector<24x8xi1>, vector<24x8xf32>
    %cst_29 = arith.constant 1.05070102 : f32
    %83 = vector.broadcast %cst_29 : f32 to vector<24x8xf32>
    %84 = arith.mulf %83, %82 : vector<24x8xf32>
    %c0_30 = arith.constant 0 : index
    %c0_31 = arith.constant 0 : index
    %85 = vector.load %arg10[%c0_30, %c0_31] : memref<4x24xf32, #tpu.memory_space<vmem>>, vector<4x24xf32>
    %cst_32 = arith.constant dense<0.000000e+00> : vector<4x8xf32>
    %86 = tpu.matmul %85, %84, %cst_32 {dimension_numbers = #tpu.dot_dimension_numbers<[1], [0], [0], [1], [0, 0, 1, 1], [], []>} : vector<4x24xf32>, vector<24x8xf32>, vector<4x8xf32> -> vector<4x8xf32>
    %cst_33 = arith.constant dense<0xFF800000> : vector<8xf32>
    %87 = vector.multi_reduction <maximumf>, %86, %cst_33 [0] : vector<4x8xf32> to vector<8xf32>
    %88 = vector.shape_cast %87 : vector<8xf32> to vector<1x8xf32>
    %89 = vector.broadcast %88 : vector<1x8xf32> to vector<4x8xf32>
    %90 = arith.subf %86, %89 : vector<4x8xf32>
    %91 = math.exp %90 : vector<4x8xf32>
    %cst_34 = arith.constant dense<0.000000e+00> : vector<8xf32>
    %92 = vector.multi_reduction <add>, %91, %cst_34 [0] : vector<4x8xf32> to vector<8xf32>
    %93 = vector.shape_cast %92 : vector<8xf32> to vector<1x8xf32>
    %94 = vector.broadcast %93 : vector<1x8xf32> to vector<4x8xf32>
    %95 = arith.divf %91, %94 : vector<4x8xf32>
    %c0_35 = arith.constant 0 : index
    %c0_36 = arith.constant 0 : index
    %96 = vector.load %arg11[%c0_35, %c0_36] : memref<4x24xf32, #tpu.memory_space<vmem>>, vector<4x24xf32>
    %cst_37 = arith.constant dense<0.000000e+00> : vector<4x8xf32>
    %97 = tpu.matmul %96, %84, %cst_37 {dimension_numbers = #tpu.dot_dimension_numbers<[1], [0], [0], [1], [0, 0, 1, 1], [], []>} : vector<4x24xf32>, vector<24x8xf32>, vector<4x8xf32> -> vector<4x8xf32>
    %cst_38 = arith.constant 9.99999974E-6 : f32
    %98 = vector.broadcast %cst_38 : f32 to vector<4x8xf32>
    %99 = arith.addf %97, %98 : vector<4x8xf32>
    %100 = arith.divf %95, %99 : vector<4x8xf32>
    %cst_39 = arith.constant dense<0.000000e+00> : vector<24x8xf32>
    %101 = tpu.matmul %96, %100, %cst_39 {dimension_numbers = #tpu.dot_dimension_numbers<[0], [0], [1], [1], [0, 1, 1, 1], [], []>} : vector<4x24xf32>, vector<4x8xf32>, vector<24x8xf32> -> vector<24x8xf32>
    %102 = arith.mulf %84, %101 : vector<24x8xf32>
    %c0_40 = arith.constant 0 : index
    %c0_41 = arith.constant 0 : index
    %103 = vector.load %arg9[%c0_40, %c0_41] : memref<24x16xf32, #tpu.memory_space<vmem>>, vector<24x16xf32>
    %cst_42 = arith.constant dense<0.000000e+00> : vector<24x8xf32>
    %104 = tpu.matmul %103, %72, %cst_42 {dimension_numbers = #tpu.dot_dimension_numbers<[1], [0], [0], [1], [0, 0, 1, 1], [], []>} : vector<24x16xf32>, vector<16x8xf32>, vector<24x8xf32> -> vector<24x8xf32>
    %cst_43 = arith.constant 9.99999974E-6 : f32
    %105 = vector.broadcast %cst_43 : f32 to vector<24x8xf32>
    %106 = arith.addf %104, %105 : vector<24x8xf32>
    %107 = arith.divf %102, %106 : vector<24x8xf32>
    %cst_44 = arith.constant dense<0.000000e+00> : vector<16x8xf32>
    %108 = tpu.matmul %103, %107, %cst_44 {dimension_numbers = #tpu.dot_dimension_numbers<[0], [0], [1], [1], [0, 1, 1, 1], [], []>} : vector<24x16xf32>, vector<24x8xf32>, vector<16x8xf32> -> vector<16x8xf32>
    %109 = arith.mulf %72, %108 : vector<16x8xf32>
    %cst_45 = arith.constant 9.99999974E-6 : f32
    %110 = vector.broadcast %cst_45 : f32 to vector<16x8xf32>
    %111 = arith.addf %72, %110 : vector<16x8xf32>
    %112 = arith.divf %109, %111 : vector<16x8xf32>
    %cst_46 = arith.constant dense<0.000000e+00> : vector<16x128xf32>
    %113 = tpu.matmul %112, %69, %cst_46 {dimension_numbers = #tpu.dot_dimension_numbers<[1], [0], [0], [1], [0, 0, 1, 1], [], []>} : vector<16x8xf32>, vector<8x128xf32>, vector<16x128xf32> -> vector<16x128xf32>
    %cst_47 = arith.constant 6.250000e-02 : f32
    %114 = vector.broadcast %cst_47 : f32 to vector<16x128xf32>
    %115 = arith.mulf %113, %114 : vector<16x128xf32>
    %116 = arith.mulf %56, %115 : vector<16x128xf32>
    %c0_48 = arith.constant 0 : index
    %c0_49 = arith.constant 0 : index
    %117 = vector.load %arg4[%c0_48, %c0_49] : memref<16x48xf32, #tpu.memory_space<vmem>>, vector<16x48xf32>
    %cst_50 = arith.constant dense<0.000000e+00> : vector<16x128xf32>
    %118 = tpu.matmul %117, %44, %cst_50 {dimension_numbers = #tpu.dot_dimension_numbers<[1], [0], [0], [1], [0, 0, 1, 1], [], []>} : vector<16x48xf32>, vector<48x128xf32>, vector<16x128xf32> -> vector<16x128xf32>
    %cst_51 = arith.constant 9.99999974E-6 : f32
    %119 = vector.broadcast %cst_51 : f32 to vector<16x128xf32>
    %120 = arith.addf %118, %119 : vector<16x128xf32>
    %c0_52 = arith.constant 0 : index
    %c0_53 = arith.constant 0 : index
    %121 = vector.load %arg5[%c0_52, %c0_53] : memref<16x48xf32, #tpu.memory_space<vmem>>, vector<16x48xf32>
    %122 = arith.divf %116, %120 : vector<16x128xf32>
    %c127_i32_54 = arith.constant 127 : i32
    %123 = tpu.dynamic_rotate %122 by %c127_i32_54 dim 1 : vector<16x128xf32>, i32 -> vector<16x128xf32>
    %124 = vector.broadcast %22 : vector<1x128xf32> to vector<16x128xf32>
    %125 = arith.mulf %123, %124 : vector<16x128xf32>
    %c1_i32_55 = arith.constant 1 : i32
    %126 = tpu.dynamic_rotate %122 by %c1_i32_55 dim 1 : vector<16x128xf32>, i32 -> vector<16x128xf32>
    %127 = vector.broadcast %12 : vector<1x128xf32> to vector<16x128xf32>
    %128 = arith.mulf %126, %127 : vector<16x128xf32>
    %129 = tpu.concatenate %125, %122, %128 in 0 : vector<16x128xf32>, vector<16x128xf32>, vector<16x128xf32> -> vector<48x128xf32>
    %cst_56 = arith.constant dense<0.000000e+00> : vector<16x128xf32>
    %130 = tpu.matmul %121, %129, %cst_56 {dimension_numbers = #tpu.dot_dimension_numbers<[1], [0], [0], [1], [0, 0, 1, 1], [], []>} : vector<16x48xf32>, vector<48x128xf32>, vector<16x128xf32> -> vector<16x128xf32>
    %131 = arith.mulf %37, %130 : vector<16x128xf32>
    %c0_57 = arith.constant 0 : index
    %c0_58 = arith.constant 0 : index
    %132 = vector.load %arg6[%c0_57, %c0_58] : memref<8x48xf32, #tpu.memory_space<vmem>>, vector<8x48xf32>
    %c0_59 = arith.constant 0 : index
    %c0_60 = arith.constant 0 : index
    %133 = vector.load %arg7[%c0_59, %c0_60] : memref<16x128xf32, #tpu.memory_space<vmem>>, vector<16x128xf32>
    %134 = arith.divf %131, %133 : vector<16x128xf32>
    %c127_i32_61 = arith.constant 127 : i32
    %135 = tpu.dynamic_rotate %134 by %c127_i32_61 dim 1 : vector<16x128xf32>, i32 -> vector<16x128xf32>
    %136 = vector.broadcast %22 : vector<1x128xf32> to vector<16x128xf32>
    %137 = arith.mulf %135, %136 : vector<16x128xf32>
    %c1_i32_62 = arith.constant 1 : i32
    %138 = tpu.dynamic_rotate %134 by %c1_i32_62 dim 1 : vector<16x128xf32>, i32 -> vector<16x128xf32>
    %139 = vector.broadcast %12 : vector<1x128xf32> to vector<16x128xf32>
    %140 = arith.mulf %138, %139 : vector<16x128xf32>
    %141 = tpu.concatenate %137, %134, %140 in 0 : vector<16x128xf32>, vector<16x128xf32>, vector<16x128xf32> -> vector<48x128xf32>
    %cst_63 = arith.constant dense<0.000000e+00> : vector<8x128xf32>
    %142 = tpu.matmul %132, %141, %cst_63 {dimension_numbers = #tpu.dot_dimension_numbers<[1], [0], [0], [1], [0, 0, 1, 1], [], []>} : vector<8x48xf32>, vector<48x128xf32>, vector<8x128xf32> -> vector<8x128xf32>
    %c0_64 = arith.constant 0 : index
    %c0_65 = arith.constant 0 : index
    %c0_66 = arith.constant 0 : index
    %143 = vector.load %arg12[%c0_64, %c0_65, %c0_66] : memref<1x8x128xf32, #tpu.memory_space<vmem>>, vector<1x8x128xf32>
    %144 = vector.shape_cast %143 : vector<1x8x128xf32> to vector<8x128xf32>
    %145 = vector.shape_cast %142 : vector<8x128xf32> to vector<1x8x128xf32>
    tpu.vector_store %arg12[%c0_64, %c0_65, %c0_66], %145 {strides = array<i32>} : memref<1x8x128xf32, #tpu.memory_space<vmem>>, vector<1x8x128xf32>,
    return
  }
  func.func @transform_0(%arg0: i32) -> (i32, i32, i32) {
    %c0_i32 = arith.constant 0 : i32
    %c0_i32_0 = arith.constant 0 : i32
    %c0_i32_1 = arith.constant 0 : i32
    return %arg0, %c0_i32, %c0_i32_0 : i32, i32, i32
  }
  func.func @transform_1(%arg0: i32) -> (i32, i32) {
    %c0_i32 = arith.constant 0 : i32
    %c0_i32_0 = arith.constant 0 : i32
    %c0_i32_1 = arith.constant 0 : i32
    return %c0_i32, %c0_i32_0 : i32, i32
  }
  func.func @transform_2(%arg0: i32) -> (i32, i32) {
    %c0_i32 = arith.constant 0 : i32
    %c0_i32_0 = arith.constant 0 : i32
    %c0_i32_1 = arith.constant 0 : i32
    return %c0_i32, %c0_i32_0 : i32, i32
  }
  func.func @transform_3(%arg0: i32) -> (i32, i32) {
    %c0_i32 = arith.constant 0 : i32
    %c0_i32_0 = arith.constant 0 : i32
    %c0_i32_1 = arith.constant 0 : i32
    return %c0_i32, %c0_i32_0 : i32, i32
  }
  func.func @transform_4(%arg0: i32) -> (i32, i32) {
    %c0_i32 = arith.constant 0 : i32
    %c0_i32_0 = arith.constant 0 : i32
    %c0_i32_1 = arith.constant 0 : i32
    return %c0_i32, %c0_i32_0 : i32, i32
  }
  func.func @transform_5(%arg0: i32) -> (i32, i32) {
    %c0_i32 = arith.constant 0 : i32
    %c0_i32_0 = arith.constant 0 : i32
    %c0_i32_1 = arith.constant 0 : i32
    return %c0_i32, %c0_i32_0 : i32, i32
  }
  func.func @transform_6(%arg0: i32) -> (i32, i32) {
    %c0_i32 = arith.constant 0 : i32
    %c0_i32_0 = arith.constant 0 : i32
    %c0_i32_1 = arith.constant 0 : i32
    return %c0_i32, %c0_i32_0 : i32, i32
  }
  func.func @transform_7(%arg0: i32) -> (i32, i32) {
    %c0_i32 = arith.constant 0 : i32
    %c0_i32_0 = arith.constant 0 : i32
    %c0_i32_1 = arith.constant 0 : i32
    return %c0_i32, %c0_i32_0 : i32, i32
  }
  func.func @transform_8(%arg0: i32) -> (i32, i32) {
    %c0_i32 = arith.constant 0 : i32
    %c0_i32_0 = arith.constant 0 : i32
    %c0_i32_1 = arith.constant 0 : i32
    return %c0_i32, %c0_i32_0 : i32, i32
  }
  func.func @transform_9(%arg0: i32) -> (i32, i32) {
    %c0_i32 = arith.constant 0 : i32
    %c0_i32_0 = arith.constant 0 : i32
    %c0_i32_1 = arith.constant 0 : i32
    return %c0_i32, %c0_i32_0 : i32, i32
  }
  func.func @transform_10(%arg0: i32) -> (i32, i32) {
    %c0_i32 = arith.constant 0 : i32
    %c0_i32_0 = arith.constant 0 : i32
    %c0_i32_1 = arith.constant 0 : i32
    return %c0_i32, %c0_i32_0 : i32, i32
  }
  func.func @transform_11(%arg0: i32) -> (i32, i32, i32) {
    %c0_i32 = arith.constant 0 : i32
    %c0_i32_0 = arith.constant 0 : i32
    %c0_i32_1 = arith.constant 0 : i32
    return %arg0, %c0_i32, %c0_i32_0 : i32, i32, i32
  }
}

</mosaic_0001>

<bundles_post_ra>
// kernel: tpu_custom_call.1
= control target key start
LH: loop header
LB: loop body
LE: loop exit
PB: predicated region body
PF: predicated region fallthrough
CT: control target
= control target key end

     0   :  { %16 = vsyncpa [#allocation3], 0  ;;  %s2043_s0 = inlined_call_operand.hbm [shape: f32[1,8,128], index: 0, kind: input, shape index: {}]   ;;  %s2044_s1 = inlined_call_operand.vmem [shape: f32[16,24], index: 1, kind: input, shape index: {}]   ;;  %s2045_s2 = inlined_call_operand.vmem [shape: f32[16,48], index: 2, kind: input, shape index: {}]   ;;  %s2046_s3 = inlined_call_operand.vmem [shape: f32[16,48], index: 3, kind: input, shape index: {}]   ;;  %s2047_s4 = inlined_call_operand.vmem [shape: f32[16,48], index: 4, kind: input, shape index: {}]   ;;  %s2048_s5 = inlined_call_operand.vmem [shape: f32[8,48], index: 5, kind: input, shape index: {}]   ;;  %s2049_s6 = inlined_call_operand.vmem [shape: f32[16,128], index: 6, kind: input, shape index: {}]   ;;  %s2050_s7 = inlined_call_operand.vmem [shape: f32[24,16], index: 7, kind: input, shape index: {}]   ;;  %s2051_s8 = inlined_call_operand.vmem [shape: f32[24,16], index: 8, kind: input, shape index: {}]   ;;  %s2052_s9 = inlined_call_operand.vmem [shape: f32[4,24], index: 9, kind: input, shape index: {}]   ;;  %s2053_s10 = inlined_call_operand.vmem [shape: f32[4,24], index: 10, kind: input, shape index: {}]   ;;  %s2054_s11 = inlined_call_operand.hbm [shape: f32[1,8,128], index: 11, kind: output, shape index: {}]  }
   0x1   :  { %17 = vsyncpa [#allocation4], 0  ;;  %s1714_s17 = smov [#allocation2]  }
   0x2   :  { %s24_s18 = sshll.u32 %s1714_s17, 4  ;;  %s25_s18 = int_to_ptr.vmem [resolvable:$true] %s24_s18 }
   0x3   :  { %s1678_s19 = scalar_lea.vmem %s25_s18, 128  ;;  %p1683_p1 = scmp.lt.s32.totalorder %s25_s18, %s25_s18 }
   0x4   :  { %p1679_p0 = scmp.ne.s32.totalorder %s25_s18, %s1678_s19  ;;  %p1684_p2 = scmp.lt.s32.totalorder %s1678_s19, %s1678_s19 }
   0x6   :  { %p1685_p3 = por %p1684_p2, %p1683_p1 }
   0x8   :  { %p1686_p4 = pnand %p1685_p3, %p1679_p0 }
   0xa   :  { %1689 = shalt.err (!%p1686_p4)
}
   0xb   :  { %27 = dma.hbm_to_vmem [thread:$0]  %s2043_s0, 128, %s25_s18, [#allocation3]  }
   0xc   :  { %1710 = dma.done.wait [#allocation3], 128  }
   0xd   :  { %1711 = vsyncadd [#allocation3], 4294967168  ;;  %vm73_vm0 = vcmask 195584   ;;  %v51_v0 = vld [vmem:[#allocation2] sm:$0xff]  ;;  %s1715_s24 = smov 127   ;;  %s1716_s25 = smov 1   ;;  %v52_v2 = vlaneseq }
   0xe   :  { %v55_v1 = vld [vmem:[%s2044_s1] sm:$0xff]  ;;  %70 = vrot.lane.b32.xlu0 %v51_v0, %s1715_s24  ;;  %v1717_v5 = vmov 0.0   ;;  %v56_v12 = vld [vmem:[%s2044_s1 + $0x8] sm:$0xff]  ;;  %vm183_vm5 = vcmask 392192   ;;  %v1718_v42 = vmov 1.0   ;;  %vm1719_vm11 = vmmov 0  }
   0xf   :  { %1488 = vmatprep.mubr.msk.f32.mxu0 %vm73_vm0, %v55_v1  ;;  %v1791_v3 = vand.u32 127, %v52_v2  ;;  %v181_v26 = vld [vmem:[%s2045_s2] sm:$0xff]  ;;  %v182_v36 = vld [vmem:[%s2045_s2 + $0x8] sm:$0xff]  ;;  %v280_v37 = vshrl.u32 %v52_v2, 7  ;;  %vm369_vm12 = vcmask 130048   ;;  %v368_v63 = vld [vmem:[%s2050_s7 + $0x10] sm:$0xff] }
  0x10   :  { %1503 = vmatprep.mubr.msk.f32.mxu1 %vm183_vm5, %v181_v26  ;;  %v366_v61 = vld [vmem:[%s2050_s7] sm:$0xff]  ;;  %v367_v62 = vld [vmem:[%s2050_s7 + $0x8] sm:$0xff] }
  0x11   :  { %v54_v4 = vand.u32 15, %v1791_v3  ;;  %v283_v38 = vadd.s32 1, %v280_v37  ;;  %v281_v39 = vmul.u32 16, %v280_v37  ;;  %v781_v37 = vld [vmem:[%s2051_s8 + $0x10] sm:$0xff] }
  0x12   :  { %62 = vrot.lane.b32.xlu0 %v51_v0, %s1716_s25 }
  0x13   :  { %vm66_vm1 = vcmp.lt.s32.totalorder %v54_v4, 15  ;;  %vm57_vm2 = vcmp.ge.s32.totalorder %v54_v4, 1  ;;  %v284_v40 = vmul.u32 16, %v283_v38  ;;  %vm282_vm6 = vcmp.ge.s32.totalorder %v1791_v3, %v281_v39 }
  0x14   :  { %v1795_v6 = vsel %vm66_vm1, 1.0, %v1717_v5  ;;  %v1799_v9 = vsel %vm57_vm2, 1.0, %v1717_v5  ;;  %vm554_vm1 = vcmask 60416   ;;  %vm692_vm2 = vcmask 1043456  }
  0x15   :  { %vm285_vm7 = vcmp.lt.s32.totalorder %v1791_v3, %v284_v40 }
  0x16   :  { %vm1854_vm8 = vmand %vm282_vm6, %vm285_vm7 }
  0x80   :  { %v71_v7 = vpop.permute.xlu0 %70 }
  0x81   :  { %v72_v8 = vmul.f32 %v1795_v6, %v71_v7 }
  0x83   :  { %1482 = vmatprep.subr.mxu0 %v72_v8 }
  0x84   :  { %1483 = vmatpush3.msra.mxu0 %v72_v8  ;;  %v63_v10 = vpop.permute.xlu0 %62 }
  0x85   :  { %v64_v11 = vmul.f32 %v1799_v9, %v63_v10  ;;  %1484 = vmatprep.subr.mxu0 %v51_v0 }
  0x86   :  { %1485 = vmatpush3.msra.mxu0 %v51_v0  ;;  %v574_v0 = vld [vmem:[%s2053_s10] sm:$0xf] }
  0x87   :  { %1486 = vmatprep.subr.mxu0 %v64_v11 }
  0x88   :  { %1487 = vmatpush3.msra.mxu0 %v64_v11 }
  0x89   :  { %1489 = vmatmul.mubr.msk.f32.vlgmr.msra.gmra.mxu0 %vm73_vm0, %v56_v12  ;;  %1506 = vmatprep.subr.msk.mxu0 %vm1854_vm8, %v1718_v42 }
  0x8a   :  { %1507 = vmatpush3.xpose.msk.msra.mxu0 %vm1854_vm8, %v1718_v42 }
  0x8b   :  { %1511 = vmatprep.subr.mxu0 %v1717_v5 }
 0x149   :  { %v1490_v13 = vpop.f32.mrf.mxu0 }
 0x14a   :  { %v159_v14 = vmul.f32 1.442695, %v1490_v13  ;;  %vm156_vm3 = vcmp.gt.f32.partialorder %v1490_v13, 0.0 }
 0x14b   :  { %v146_v15 = vpop.f32.mrf.mxu0 }
 0x14c   :  { %1632 = vpow2.f32 %v159_v14  ;;  %v157_v16 = vmul.f32 1.442695, %v146_v15  ;;  %vm155_vm4 = vcmp.gt.f32.partialorder %v146_v15, 0.0 }
 0x14e   :  { %1634 = vpow2.f32 %v157_v16 }
 0x159   :  { %v1633_v17 = vpop.eup %1632 }
 0x15a   :  { %v1381_v18 = vadd.f32 -1.0, %v1633_v17 }
 0x15b   :  { %v1635_v19 = vpop.eup %1634 }
 0x15c   :  { %v164_v20 = vmul.f32 1.6732632, %v1381_v18  ;;  %v1380_v21 = vadd.f32 -1.0, %v1635_v19 }
 0x15e   :  { %v166_v22 = vsel %vm156_vm3, %v1490_v13, %v164_v20  ;;  %v163_v23 = vmul.f32 1.6732632, %v1380_v21  ;;  %vm682_vm3 = vcmask 31744  }
 0x15f   :  { %v1806_v24 = vmul.f32 1.050701, %v166_v22 }
 0x160   :  { %v165_v25 = vsel %vm155_vm4, %v146_v15, %v163_v23 }
 0x161   :  { %171 = vrot.lane.b32.xlu0 %v1806_v24, %s1716_s25  ;;  %177 = vrot.lane.b32.xlu1 %v1806_v24, %s1715_s24  ;;  %v1815_v27 = vmul.f32 1.050701, %v165_v25 }
 0x165   :  { %175 = vrot.lane.b32.xlu1 %v1815_v27, %s1715_s24 }
 0x169   :  { %169 = vrot.lane.b32.xlu1 %v1815_v27, %s1716_s25 }
 0x17f   :  { %650 = vxpose.xlu0.b32.start.end [1/1] (short) (narrow) %v574_v0, 24 }
 0x1d3   :  { %v178_v28 = vpop.permute.xlu1 %177  ;;  %v172_v32 = vpop.permute.xlu0 %171 }
 0x1d4   :  { %v1823_v29 = vmul.f32 %v1795_v6, %v178_v28  ;;  %v1835_v34 = vmul.f32 %v1799_v9, %v172_v32  ;;  %v480_v32 = vld [vmem:[%s2052_s9] sm:$0xf] }
 0x1d6   :  { %1491 = vmatprep.subr.mxu1 %v1823_v29 }
 0x1d7   :  { %1492 = vmatpush3.msra.mxu1 %v1823_v29  ;;  %v176_v30 = vpop.permute.xlu1 %175 }
 0x1d8   :  { %v1828_v31 = vmul.f32 %v1795_v6, %v176_v30 }
 0x1da   :  { %1493 = vmatprep.subr.mxu1 %v1828_v31 }
 0x1db   :  { %1494 = vmatpush3.msra.mxu1 %v1828_v31  ;;  %v170_v33 = vpop.permute.xlu1 %169 }
 0x1dc   :  { %1495 = vmatprep.subr.mxu1 %v1806_v24  ;;  %v1840_v35 = vmul.f32 %v1799_v9, %v170_v33  ;;  %v779_v33 = vld [vmem:[%s2051_s8] sm:$0xff] }
 0x1dd   :  { %1496 = vmatpush3.msra.mxu1 %v1806_v24  ;;  %877 = vxpose.xlu1.b32.start [1/3] (short) (narrow) %v779_v33, 16 }
 0x1de   :  { %1497 = vmatprep.subr.mxu1 %v1815_v27 }
 0x1df   :  { %1498 = vmatpush3.msra.mxu1 %v1815_v27 }
 0x1e0   :  { %1499 = vmatprep.subr.mxu1 %v1835_v34 }
 0x1e1   :  { %1500 = vmatpush3.msra.mxu1 %v1835_v34 }
 0x1e2   :  { %1501 = vmatprep.subr.mxu1 %v1840_v35 }
 0x1e3   :  { %1502 = vmatpush3.msra.mxu1 %v1840_v35 }
 0x1e4   :  { %1504 = vmatmul.mubr.msk.f32.vlgmr.msra.gmra.mxu1 %vm183_vm5, %v182_v36  ;;  %1533 = vmatprep.subr.mxu1 %v1717_v5  ;;  %v780_v36 = vld [vmem:[%s2051_s8 + $0x8] sm:$0xff] }
 0x1e5   :  { %1539 = vmatprep.mubr.msk.f32.mxu1 %vm1719_vm11, %v1717_v5  ;;  %878 = vxpose.xlu1.b32.cont [2/3] (short) (narrow) %v780_v36, 16 }
 0x1e9   :  { %879 = vxpose.xlu1.b32.end [3/3] (short) (narrow) %v781_v37, 16 }
 0x2a4   :  { %v1505_v43 = vpop.f32.mrf.mxu1 }
 0x2a5   :  { %v269_v44 = vmul.f32 1.442695, %v1505_v43  ;;  %vm266_vm9 = vcmp.gt.f32.partialorder %v1505_v43, 0.0 }
 0x2a6   :  { %v256_v45 = vpop.f32.mrf.mxu1 }
 0x2a7   :  { %1636 = vpow2.f32 %v269_v44  ;;  %v267_v46 = vmul.f32 1.442695, %v256_v45  ;;  %vm265_vm10 = vcmp.gt.f32.partialorder %v256_v45, 0.0 }
 0x2a9   :  { %1638 = vpow2.f32 %v267_v46 }
 0x2b4   :  { %v1637_v47 = vpop.eup %1636 }
 0x2b5   :  { %v1385_v48 = vadd.f32 -1.0, %v1637_v47 }
 0x2b6   :  { %v1639_v49 = vpop.eup %1638 }
 0x2b7   :  { %v274_v50 = vmul.f32 1.6732632, %v1385_v48  ;;  %v1384_v51 = vadd.f32 -1.0, %v1639_v49 }
 0x2b9   :  { %v273_v52 = vmul.f32 1.6732632, %v1384_v51  ;;  %v276_v53 = vsel %vm266_vm9, %v1505_v43, %v274_v50 }
 0x2ba   :  { %v1867_v56 = vmul.f32 1.050701, %v276_v53 }
 0x2bb   :  { %v275_v54 = vsel %vm265_vm10, %v256_v45, %v273_v52 }
 0x2bc   :  { %v1865_v55 = vmul.f32 1.050701, %v275_v54 }
 0x2be   :  { %1508 = vmatprep.mubr.f32.mxu0 %v1865_v55 }
 0x2bf   :  { %1509 = vmatmul.mubr.f32.vlgmr.msra.gmra.mxu0 %v1867_v56 }
 0x2c0   :  { %1515 = vmatprep.mubr.msk.f32.mxu0 %vm1719_vm11, %v1717_v5 }
 0x37f   :  { %v1510_v57 = vpop.f32.mrf.mxu0 }
 0x380   :  { %v1875_v58 = vmul.f32 0.0625, %v1510_v57 }
 0x381   :  { %v355_v59 = vpop.f32.mrf.mxu0 }
 0x382   :  { %v1877_v60 = vmul.f32 0.0625, %v355_v59  ;;  %1512 = vmatpush3.msra.mxu0 %v1875_v58 }
 0x383   :  { %1513 = vmatprep.subr.mxu0 %v1717_v5 }
 0x384   :  { %1514 = vmatpush3.msra.mxu0 %v1877_v60 }
 0x385   :  { %1516 = vmatmul.mubr.msk.f32.vlgmr.msra.gmra.mxu0 %vm369_vm12, %v366_v61  ;;  %1524 = vmatprep.subr.mxu0 %v1717_v5 }
 0x386   :  { %1518 = vmatprep.mubr.msk.f32.mxu0 %vm1719_vm11, %v1717_v5 }
 0x389   :  { %1519 = vmatmul.mubr.msk.f32.gmra.mxu0 %vm369_vm12, %v367_v62 }
 0x38a   :  { %1521 = vmatprep.mubr.msk.f32.mxu0 %vm1719_vm11, %v1717_v5 }
 0x38d   :  { %1522 = vmatmul.mubr.msk.f32.gmra.mxu0 %vm369_vm12, %v368_v63 }
 0x38e   :  { %1530 = vmatprep.mubr.msk.f32.mxu0 %vm1719_vm11, %v1717_v5 }
 0x445   :  { %v445_v1 = vpop.f32.mrf.mxu0 }
 0x446   :  { %v462_v2 = vmul.f32 1.442695, %v445_v1  ;;  %vm459_vm15 = vcmp.gt.f32.partialorder %v445_v1, 0.0 }
 0x447   :  { %v1517_v3 = vpop.f32.mrf.mxu0 }
 0x448   :  { %1640 = vpow2.f32 %v462_v2  ;;  %v666_v3 = vpop.trf.xlu0 }
 0x449   :  { %v450_v4 = vpop.f32.mrf.mxu0 }
 0x44a   :  { %v464_v7 = vmul.f32 1.442695, %v450_v4  ;;  %vm460_vm13 = vcmp.gt.f32.partialorder %v450_v4, 0.0 }
 0x44b   :  { %v1520_v8 = vpop.f32.mrf.mxu0 }
 0x44c   :  { %1642 = vpow2.f32 %v464_v7 }
 0x44d   :  { %v455_v10 = vpop.f32.mrf.mxu0 }
 0x44e   :  { %v466_v11 = vmul.f32 1.442695, %v455_v10  ;;  %vm461_vm14 = vcmp.gt.f32.partialorder %v455_v10, 0.0 }
 0x44f   :  { %v1523_v12 = vpop.f32.mrf.mxu0 }
 0x450   :  { %1644 = vpow2.f32 %v466_v11 }
 0x455   :  { %v1641_v13 = vpop.eup %1640 }
 0x456   :  { %v1391_v16 = vadd.f32 -1.0, %v1641_v13 }
 0x458   :  { %v471_v20 = vmul.f32 1.6732632, %v1391_v16  ;;  %v893_v16 = vpop.trf.xlu1 }
 0x459   :  { %v1643_v14 = vpop.eup %1642 }
 0x45a   :  { %v1392_v15 = vadd.f32 -1.0, %v1643_v14  ;;  %v474_v26 = vsel %vm459_vm15, %v445_v1, %v471_v20 }
 0x45b   :  { %v1912_v30 = vmul.f32 1.050701, %v474_v26 }
 0x45c   :  { %v472_v18 = vmul.f32 1.6732632, %v1392_v15 }
 0x45d   :  { %v1645_v17 = vpop.eup %1644 }
 0x45e   :  { %v1393_v19 = vadd.f32 -1.0, %v1645_v17  ;;  %v475_v22 = vsel %vm460_vm13, %v450_v4, %v472_v18  ;;  %v1084_v17 = vld [vmem:[%s2046_s3] sm:$0xff] }
 0x45f   :  { %v1906_v28 = vmul.f32 1.050701, %v475_v22 }
 0x460   :  { %v473_v21 = vmul.f32 1.6732632, %v1393_v19 }
 0x462   :  { %v476_v23 = vsel %vm461_vm14, %v455_v10, %v473_v21  ;;  %v667_v10 = vpop.trf.xlu0 }
 0x463   :  { %v1904_v25 = vmul.f32 1.050701, %v476_v23 }
 0x465   :  { %1525 = vmatpush3.msra.mxu0 %v1904_v25  ;;  %1534 = vmatpush3.msra.mxu1 %v1904_v25 }
 0x466   :  { %1526 = vmatprep.subr.mxu0 %v1717_v5  ;;  %1535 = vmatprep.subr.mxu1 %v1717_v5  ;;  %v668_v11 = vpop.trf.xlu0 }
 0x467   :  { %1527 = vmatpush3.msra.mxu0 %v1906_v28  ;;  %1536 = vmatpush3.msra.mxu1 %v1906_v28 }
 0x468   :  { %1528 = vmatprep.subr.mxu0 %v1717_v5  ;;  %1537 = vmatprep.subr.mxu1 %v1717_v5 }
 0x469   :  { %1529 = vmatpush3.msra.mxu0 %v1912_v30  ;;  %1538 = vmatpush3.msra.mxu1 %v1912_v30 }
 0x46a   :  { %1531 = vmatmul.mubr.msk.f32.vlgmr.msra.gmra.mxu0 %vm73_vm0, %v480_v32  ;;  %1553 = vmatprep.subr.mxu1 %v1717_v5 }
 0x46b   :  { %1540 = vmatmul.mubr.msk.f32.vlgmr.msra.gmra.mxu1 %vm73_vm0, %v574_v0  ;;  %1542 = vmatprep.subr.mxu0 %v1717_v5 }
 0x46c   :  { %1554 = vmatpush3.msra.mxu1 %v1875_v58  ;;  %1557 = vmatprep.mubr.msk.f32.mxu1 %vm1719_vm11, %v1717_v5 }
 0x46d   :  { %1555 = vmatprep.subr.mxu1 %v1717_v5  ;;  %1544 = vmatprep.mubr.msk.f32.mxu0 %vm1719_vm11, %v1717_v5 }
 0x46e   :  { %1556 = vmatpush3.msra.mxu1 %v1877_v60 }
 0x46f   :  { %1558 = vmatmul.mubr.msk.f32.vlgmr.msra.gmra.mxu1 %vm369_vm12, %v779_v33 }
 0x470   :  { %1560 = vmatprep.mubr.msk.f32.mxu1 %vm1719_vm11, %v1717_v5 }
 0x473   :  { %1561 = vmatmul.mubr.msk.f32.gmra.mxu1 %vm369_vm12, %v780_v36 }
 0x474   :  { %1563 = vmatprep.mubr.msk.f32.mxu1 %vm1719_vm11, %v1717_v5 }
 0x477   :  { %1564 = vmatmul.mubr.msk.f32.gmra.mxu1 %vm369_vm12, %v781_v37 }
 0x478   :  { %1572 = vmatprep.mubr.msk.f32.mxu1 %vm73_vm0, %v893_v16 }
 0x52a   :  { %v550_v38 = vpop.f32.mrf.mxu0 }
 0x52b   :  { %v555_v39 = vsel %vm554_vm1, %v550_v38, -inf  ;;  %v644_v40 = vpop.f32.mrf.mxu1 }
 0x52c   :  { %v556_v43 = vrot.slane %v555_v39, 4  ;;  %v1532_v44 = vpop.f32.mrf.mxu0  ;;  %v645_v63 = vadd.f32 1e-05, %v644_v40 }
 0x52d   :  { %v1541_v45 = vpop.f32.mrf.mxu1 }
 0x52e   :  { %v557_v46 = vmax.f32 %v555_v39, %v556_v43 }
 0x530   :  { %v558_v47 = vrot.slane %v557_v46, 2 }
 0x532   :  { %v559_v48 = vmax.f32 %v557_v46, %v558_v47  ;;  %v894_v46 = vpop.trf.xlu1 }
 0x534   :  { %v560_v49 = vrot.slane %v559_v48, 1 }
 0x536   :  { %v561_v50 = vmax.f32 %v559_v48, %v560_v49 }
 0x538   :  { %v562_v51 = vsub.f32 %v550_v38, %v561_v50 }
 0x53a   :  { %v563_v52 = vmul.f32 1.442695, %v562_v51 }
 0x53c   :  { %1646 = vpow2.f32 %v563_v52 }
 0x53d   :  { %1648 = vrcp.f32 %v645_v63 }
 0x549   :  { %v1647_v53 = vpop.eup %1646 }
 0x54a   :  { %v565_v54 = vsel %vm554_vm1, %v1647_v53, 0.0  ;;  %v1649_v2 = vpop.eup %1648 }
 0x54b   :  { %v566_v57 = vrot.slane %v565_v54, 4 }
 0x54d   :  { %v567_v59 = vadd.f32 %v566_v57, %v565_v54 }
 0x54f   :  { %v568_v61 = vrot.slane %v567_v59, 2 }
 0x551   :  { %v569_v62 = vadd.f32 %v568_v61, %v567_v59 }
 0x553   :  { %v570_v0 = vrot.slane %v569_v62, 1 }
 0x555   :  { %v571_v1 = vadd.f32 %v570_v0, %v569_v62 }
 0x557   :  { %1650 = vrcp.f32 %v571_v1 }
 0x564   :  { %v1651_v4 = vpop.eup %1650 }
 0x565   :  { %v573_v7 = vmul.f32 %v1651_v4, %v1647_v53  ;;  %v1167_v4 = vld [vmem:[%s2047_s4] sm:$0xff] }
 0x567   :  { %v649_v8 = vmul.f32 %v1649_v2, %v573_v7 }
 0x569   :  { %1543 = vmatpush3.msk.msra.mxu0 %vm692_vm2, %v649_v8 }
 0x56a   :  { %1545 = vmatmul.mubr.msk.f32.vlgmr.msra.gmra.mxu0 %vm682_vm3, %v666_v3  ;;  %1580 = vmatprep.subr.mxu0 %v1823_v29 }
 0x56b   :  { %1581 = vmatpush3.msra.mxu0 %v1823_v29  ;;  %1547 = vmatprep.mubr.msk.f32.mxu0 %vm1719_vm11, %v1717_v5  ;;  %v857_v29 = vpop.f32.mrf.mxu1 }
 0x56c   :  { %1582 = vmatprep.subr.mxu0 %v1828_v31  ;;  %v858_v19 = vadd.f32 1e-05, %v857_v29 }
 0x56d   :  { %1583 = vmatpush3.msra.mxu0 %v1828_v31  ;;  %v1559_v31 = vpop.f32.mrf.mxu1 }
 0x56e   :  { %1548 = vmatmul.mubr.msk.f32.gmra.mxu0 %vm682_vm3, %v667_v10  ;;  %1584 = vmatprep.subr.mxu0 %v1806_v24 }
 0x56f   :  { %1585 = vmatpush3.msra.mxu0 %v1806_v24  ;;  %1550 = vmatprep.mubr.msk.f32.mxu0 %vm1719_vm11, %v1717_v5  ;;  %v862_v12 = vpop.f32.mrf.mxu1 }
 0x570   :  { %1586 = vmatprep.subr.mxu0 %v1815_v27  ;;  %v863_v18 = vadd.f32 1e-05, %v862_v12  ;;  %v1168_v12 = vld [vmem:[%s2047_s4 + $0x8] sm:$0xff] }
 0x571   :  { %1587 = vmatpush3.msra.mxu0 %v1815_v27  ;;  %v1562_v13 = vpop.f32.mrf.mxu1 }
 0x572   :  { %1551 = vmatmul.mubr.msk.f32.gmra.mxu0 %vm682_vm3, %v668_v11  ;;  %1588 = vmatprep.subr.mxu0 %v1835_v34  ;;  %v1270_v13 = vld [vmem:[%s2049_s6 + $0x8] sm:$0xff] }
 0x573   :  { %1589 = vmatpush3.msra.mxu0 %v1835_v34  ;;  %v867_v14 = vpop.f32.mrf.mxu1  ;;  %v1085_v34 = vld [vmem:[%s2046_s3 + $0x8] sm:$0xff]  ;;  %1592 = vmatprep.mubr.msk.f32.mxu0 %vm183_vm5, %v1084_v17 }
 0x574   :  { %1590 = vmatprep.subr.mxu0 %v1840_v35 }
 0x575   :  { %1591 = vmatpush3.msra.mxu0 %v1840_v35  ;;  %v1565_v15 = vpop.f32.mrf.mxu1  ;;  %v868_v35 = vadd.f32 1e-05, %v867_v14  ;;  %v1269_v14 = vld [vmem:[%s2049_s6] sm:$0xff] }
 0x576   :  { %1610 = vmatprep.subr.mxu0 %v1717_v5  ;;  %1593 = vmatmul.mubr.msk.f32.vlgmr.msra.gmra.mxu0 %vm183_vm5, %v1085_v34 }
 0x577   :  { %1622 = vmatprep.mubr.msk.f32.mxu0 %vm1719_vm11, %v1717_v5  ;;  %1652 = vrcp.f32 %v868_v35 }
 0x578   :  { %1654 = vrcp.f32 %v863_v18 }
 0x579   :  { %1656 = vrcp.f32 %v858_v19 }
 0x584   :  { %v1653_v26 = vpop.eup %1652 }
 0x585   :  { %v1655_v37 = vpop.eup %1654 }
 0x586   :  { %v1657_v43 = vpop.eup %1656 }
 0x62a   :  { %v762_v20 = vpop.f32.mrf.mxu0 }
 0x62b   :  { %v776_v39 = vmul.f32 %v762_v20, %v1912_v30 }
 0x62c   :  { %v1546_v21 = vpop.f32.mrf.mxu0 }
 0x62d   :  { %v872_v45 = vmul.f32 %v1657_v43, %v776_v39 }
 0x62e   :  { %v767_v22 = vpop.f32.mrf.mxu0 }
 0x62f   :  { %v777_v33 = vmul.f32 %v767_v22, %v1906_v28  ;;  %v993_v28 = vadd.f32 1e-05, %v1875_v58 }
 0x630   :  { %v1549_v23 = vpop.f32.mrf.mxu0 }
 0x631   :  { %v874_v44 = vmul.f32 %v1655_v37, %v777_v33 }
 0x632   :  { %v772_v32 = vpop.f32.mrf.mxu0 }
 0x633   :  { %v778_v36 = vmul.f32 %v772_v32, %v1904_v25  ;;  %v992_v25 = vadd.f32 1e-05, %v1877_v60 }
 0x634   :  { %v1552_v38 = vpop.f32.mrf.mxu0 }
 0x635   :  { %v876_v40 = vmul.f32 %v1653_v26, %v778_v36  ;;  %1658 = vrcp.f32 %v992_v25 }
 0x636   :  { %1660 = vrcp.f32 %v993_v28  ;;  %v1594_v41 = vpop.f32.mrf.mxu0 }
 0x637   :  { %1566 = vmatprep.subr.mxu1 %v876_v40 }
 0x638   :  { %1567 = vmatpush3.msra.mxu1 %v876_v40  ;;  %v1158_v54 = vpop.f32.mrf.mxu0 }
 0x639   :  { %1568 = vmatprep.subr.mxu1 %v874_v44  ;;  %v1159_v57 = vadd.f32 1e-05, %v1158_v54 }
 0x63a   :  { %1569 = vmatpush3.msra.mxu1 %v874_v44 }
 0x63b   :  { %1570 = vmatprep.subr.mxu1 %v872_v45 }
 0x63c   :  { %1571 = vmatpush3.msra.mxu1 %v872_v45 }
 0x63d   :  { %1573 = vmatmul.mubr.msk.f32.vlgmr.msra.gmra.mxu1 %vm73_vm0, %v894_v46  ;;  %1575 = vmatprep.subr.msk.mxu1 %vm1854_vm8, %v1718_v42  ;;  %vm998_vm0 = vcmask 64512  }
 0x63e   :  { %1576 = vmatpush3.msk.msra.mxu1 %vm1854_vm8, %v1718_v42  ;;  %v1164_v42 = vadd.f32 1e-05, %v1594_v41 }
 0x640   :  { %1662 = vrcp.f32 %v1164_v42 }
 0x641   :  { %1664 = vrcp.f32 %v1159_v57 }
 0x642   :  { %v1659_v50 = vpop.eup %1658  ;;  %1666 = vrcp.f32 %v1270_v13 }
 0x643   :  { %v1661_v51 = vpop.eup %1660  ;;  %1668 = vrcp.f32 %v1269_v14 }
 0x64d   :  { %v1663_v62 = vpop.eup %1662 }
 0x64e   :  { %v1665_v2 = vpop.eup %1664 }
 0x64f   :  { %v1667_v15 = vpop.eup %1666 }
 0x650   :  { %v1669_v34 = vpop.eup %1668 }
 0x6fd   :  { %v1574_v30 = vpop.f32.mrf.mxu1 }
 0x6fe   :  { %v991_v47 = vmul.f32 %v1574_v30, %v1875_v58 }
 0x6ff   :  { %v981_v48 = vpop.f32.mrf.mxu1 }
 0x700   :  { %v990_v49 = vmul.f32 %v981_v48, %v1877_v60  ;;  %v997_v53 = vmul.f32 %v1661_v51, %v991_v47 }
 0x702   :  { %v995_v52 = vmul.f32 %v1659_v50, %v990_v49 }
 0x704   :  { %1577 = vmatprep.mubr.msk.f32.mxu1 %vm998_vm0, %v995_v52 }
 0x705   :  { %1578 = vmatmul.mubr.msk.f32.vlgmr.msra.gmra.mxu1 %vm998_vm0, %v997_v53 }
 0x706   :  { %1607 = vmatprep.mubr.msk.f32.mxu1 %vm183_vm5, %v1167_v4 }
 0x7c5   :  { %v1579_v59 = vpop.f32.mrf.mxu1 }
 0x7c6   :  { %v1081_v61 = vmul.f32 0.0625, %v1579_v59 }
 0x7c7   :  { %v1071_v58 = vpop.f32.mrf.mxu1 }
 0x7c8   :  { %v1083_v63 = vmul.f32 %v1081_v61, %v1867_v56  ;;  %v1080_v60 = vmul.f32 0.0625, %v1071_v58 }
 0x7ca   :  { %v1172_v0 = vmul.f32 %v1663_v62, %v1083_v63  ;;  %v1082_v1 = vmul.f32 %v1080_v60, %v1865_v55 }
 0x7cc   :  { %v1170_v3 = vmul.f32 %v1665_v2, %v1082_v1  ;;  %1181 = vrot.lane.b32.xlu0 %v1172_v0, %s1716_s25 }
 0x7ce   :  { %1179 = vrot.lane.b32.xlu1 %v1170_v3, %s1716_s25 }
 0x7d0   :  { %1175 = vrot.lane.b32.xlu0 %v1172_v0, %s1715_s24 }
 0x7d2   :  { %1173 = vrot.lane.b32.xlu1 %v1170_v3, %s1715_s24 }
 0x83e   :  { %v1182_v56 = vpop.permute.xlu0 %1181 }
 0x83f   :  { %v1184_v7 = vmul.f32 %v1799_v9, %v1182_v56 }
 0x840   :  { %v1180_v55 = vpop.permute.xlu1 %1179 }
 0x841   :  { %v1183_v8 = vmul.f32 %v1799_v9, %v1180_v55  ;;  %1595 = vmatprep.subr.mxu1 %v1184_v7 }
 0x842   :  { %1596 = vmatpush3.msra.mxu1 %v1184_v7  ;;  %v1176_v10 = vpop.permute.xlu0 %1175 }
 0x843   :  { %1597 = vmatprep.subr.mxu1 %v1183_v8  ;;  %v1178_v29 = vmul.f32 %v1795_v6, %v1176_v10 }
 0x844   :  { %1598 = vmatpush3.msra.mxu1 %v1183_v8  ;;  %v1174_v11 = vpop.permute.xlu1 %1173 }
 0x845   :  { %1599 = vmatprep.subr.mxu1 %v1172_v0  ;;  %v1177_v31 = vmul.f32 %v1795_v6, %v1174_v11 }
 0x846   :  { %1600 = vmatpush3.msra.mxu1 %v1172_v0 }
 0x847   :  { %1601 = vmatprep.subr.mxu1 %v1170_v3 }
 0x848   :  { %1602 = vmatpush3.msra.mxu1 %v1170_v3 }
 0x849   :  { %1603 = vmatprep.subr.mxu1 %v1178_v29 }
 0x84a   :  { %1604 = vmatpush3.msra.mxu1 %v1178_v29 }
 0x84b   :  { %1605 = vmatprep.subr.mxu1 %v1177_v31 }
 0x84c   :  { %1606 = vmatpush3.msra.mxu1 %v1177_v31 }
 0x84d   :  { %1608 = vmatmul.mubr.msk.f32.vlgmr.msra.gmra.mxu1 %vm183_vm5, %v1168_v12 }
 0x90d   :  { %v1609_v16 = vpop.f32.mrf.mxu1 }
 0x90e   :  { %v1267_v17 = vmul.f32 %v1609_v16, %v1806_v24 }
 0x90f   :  { %v1257_v35 = vpop.f32.mrf.mxu1 }
 0x910   :  { %v1274_v18 = vmul.f32 %v1667_v15, %v1267_v17  ;;  %v1266_v19 = vmul.f32 %v1257_v35, %v1815_v27 }
 0x912   :  { %v1272_v20 = vmul.f32 %v1669_v34, %v1266_v19  ;;  %1283 = vrot.lane.b32.xlu0 %v1274_v18, %s1716_s25 }
 0x914   :  { %1281 = vrot.lane.b32.xlu1 %v1272_v20, %s1716_s25 }
 0x916   :  { %1277 = vrot.lane.b32.xlu0 %v1274_v18, %s1715_s24 }
 0x918   :  { %1275 = vrot.lane.b32.xlu1 %v1272_v20, %s1715_s24  ;;  %s1720_s24 = smov [#allocation5]  }
 0x919   :  { %s1367_s25 = sshll.u32 %s1720_s24, 4  ;;  %s1368_s25 = int_to_ptr.vmem [resolvable:$true] %s1367_s25 }
 0x91a   :  { %s1690_s13 = scalar_lea.vmem %s1368_s25, 128  ;;  %p1695_p6 = scmp.lt.s32.totalorder %s1368_s25, %s1368_s25 }
 0x91b   :  { %p1691_p5 = scmp.ne.s32.totalorder %s1368_s25, %s1690_s13  ;;  %p1696_p7 = scmp.lt.s32.totalorder %s1690_s13, %s1690_s13 }
 0x91d   :  { %p1697_p8 = por %p1696_p7, %p1695_p6 }
 0x91f   :  { %p1698_p9 = pnand %p1697_p8, %p1691_p5 }
 0x984   :  { %v1284_v21 = vpop.permute.xlu0 %1283 }
 0x985   :  { %v1286_v22 = vmul.f32 %v1799_v9, %v1284_v21 }
 0x986   :  { %v1282_v23 = vpop.permute.xlu1 %1281 }
 0x987   :  { %v1285_v24 = vmul.f32 %v1799_v9, %v1282_v23  ;;  %1611 = vmatpush3.msra.mxu0 %v1286_v22  ;;  %v1268_v9 = vld [vmem:[%s2048_s5] sm:$0xff] }
 0x988   :  { %1612 = vmatprep.subr.mxu0 %v1717_v5  ;;  %v1278_v27 = vpop.permute.xlu0 %1277 }
 0x989   :  { %1613 = vmatpush3.msra.mxu0 %v1285_v24  ;;  %v1280_v32 = vmul.f32 %v1795_v6, %v1278_v27 }
 0x98a   :  { %1614 = vmatprep.subr.mxu0 %v1717_v5  ;;  %v1276_v26 = vpop.permute.xlu1 %1275 }
 0x98b   :  { %1615 = vmatpush3.msra.mxu0 %v1274_v18  ;;  %v1279_v33 = vmul.f32 %v1795_v6, %v1276_v26 }
 0x98c   :  { %1616 = vmatprep.subr.mxu0 %v1717_v5 }
 0x98d   :  { %1617 = vmatpush3.msra.mxu0 %v1272_v20 }
 0x98e   :  { %1618 = vmatprep.subr.mxu0 %v1717_v5 }
 0x98f   :  { %1619 = vmatpush3.msra.mxu0 %v1280_v32 }
 0x990   :  { %1620 = vmatprep.subr.mxu0 %v1717_v5 }
 0x991   :  { %1621 = vmatpush3.msra.mxu0 %v1279_v33 }
 0x992   :  { %1623 = vmatmul.mubr.msk.f32.vlgmr.msra.gmra.mxu0 %vm183_vm5, %v1268_v9 }
 0xa52   :  { %v1356_v36 = vpop.f32.mrf.mxu0 }
 0xa53   :  { %1360 = vst [vmem:[#allocation5] sm:$0xff] %v1356_v36 }
 0xa54   :  { %v1624_v37 = vpop.f32.mrf.mxu0 }
 0xa55   :  { %1701 = shalt.err (!%p1698_p9)
}
 0xa56   :  { %1370 = dma.vmem_to_hbm [thread:$0]  %s1368_s25, 128, %s2054_s11, [#allocation4]  }
 0xa57   :  { %1712 = dma.done.wait [#allocation4], 128  }
 0xa58   :  { %1713 = vsyncadd [#allocation4], 4294967168 }
 0xa59   :  { %1374 = vsyncpa [#allocation3], 1 }
 0xa5a   :  { %1375 = vsyncpa [#allocation4], 1 }

</bundles_post_ra>
